<compile_context>
chip_gen: v7x
topology: tpu7x:2x2x1
jax: 0.10.0
libtpu: 0.0.40
codegen_flags: <defaults>
</compile_context>

<pallas_src>
import functools

import jax
import jax.numpy as jnp
from jax.experimental import pallas as pl
from jax.experimental.pallas import tpu as pltpu

_LANE = 128
_PALLAS_MIN_ELEMS = 1 << 14   # below this, fused XLA beats a kernel launch


def _round_up(x, m):
    return ((x + m - 1) // m) * m


def _sublane_pack(dtype):
    # Sub-32-bit dtypes pack along sublanes: f32 -> 8, bf16 -> 16, int8/fp8 -> 32.
    return 8 * max(1, 4 // jnp.dtype(dtype).itemsize)


def _device_kind():
    try:
        return jax.devices()[0].device_kind.lower()
    except Exception:
        return "unknown"


def _is_multi_tc(kind):
    # v7x has 2 TensorCores per chip; v5e/v6e have 1.
    return ("v7" in kind) or ("7x" in kind)


def _vmem_budget(kind):
    # (target bytes per x buffer, vmem_limit_bytes)
    if _is_multi_tc(kind):
        return 6 * 1024 * 1024, 48 * 1024 * 1024    # v7x: 64 MiB physical per TC
    return 8 * 1024 * 1024, 64 * 1024 * 1024        # v5e/v6e: 128 MiB physical


def _kernel_2d(x_ref, w_ref, o_ref, *, K, F):
    # x_ref: (block_n, K*F), w_ref: (1, K*F), o_ref: (block_n, F).
    # Static, 128-aligned lane slices -> zero-cost views; f32 accumulate on VPU.
    acc = x_ref[:, 0:F].astype(jnp.float32) * w_ref[:, 0:F].astype(jnp.float32)
    for k in range(1, K):
        lo = k * F
        acc += (x_ref[:, lo:lo + F].astype(jnp.float32)
                * w_ref[:, lo:lo + F].astype(jnp.float32))
    o_ref[...] = acc.astype(o_ref.dtype)


def _kernel_3d(x_ref, w_ref, o_ref):
    # x_ref: (block_n, K, block_f), w_ref: (1, K, block_f), o_ref: (block_n, block_f).
    # One cross-sublane reduce on the otherwise-idle XLU (fallback path only).
    x = x_ref[...].astype(jnp.float32)
    w = w_ref[...].astype(jnp.float32)
    o_ref[...] = jnp.sum(x * w, axis=1).astype(o_ref.dtype)


def _choose_blocks_3d(N, K, F, itemsize, pack, target_bytes, multi_tc):
    # In the 3-D tile the minor dims are (K, block_f): K pads to the dtype's
    # sublane pack (dtype-aware VMEM estimate).
    k_pad = _round_up(K, pack)

    def row_bytes(bf):
        return k_pad * _round_up(bf, _LANE) * itemsize

    block_f = F
    if F % _LANE == 0 and pack * row_bytes(F) > target_bytes:
        bf = max(_LANE, (target_bytes // (pack * k_pad * itemsize)) // _LANE * _LANE)
        block_f = min(F, bf)

    bn = max(pack, (target_bytes // row_bytes(block_f)) // pack * pack)
    bn = min(bn, _round_up(N, pack))
    if multi_tc and N > pack and bn >= N and block_f >= F:
        bn = _round_up((N + 1) // 2, pack)   # let v7x's 2 TCs shard the batch axis
    return bn, block_f


@functools.partial(jax.jit, static_argnames=("use_pallas",))
def combination_forward(x, comb_weight, *, use_pallas=None):
    """x: (N, K, F), comb_weight: (1, K, F)  ->  (N, F). Eval-mode forward."""
    N, K, F = x.shape
    assert comb_weight.shape == (1, K, F)

    if use_pallas is None:
        use_pallas = x.size >= _PALLAS_MIN_ELEMS
    if not use_pallas:
        # Tiny problem: per-step overhead + DMA setup dominate; let XLA fuse.
        return jnp.sum(x * comb_weight.astype(x.dtype), axis=1)

    kind = _device_kind()
    multi_tc = _is_multi_tc(kind)
    target_bytes, vmem_limit = _vmem_budget(kind)

    itemsize = jnp.dtype(x.dtype).itemsize
    pack = _sublane_pack(x.dtype)

    cost = pl.CostEstimate(
        flops=2 * N * K * F,
        transcendentals=0,
        bytes_accessed=itemsize * (N * K * F + K * F + N * F),
    )
    compiler_params = pltpu.CompilerParams(
        dimension_semantics=("parallel",),
        vmem_limit_bytes=vmem_limit,
    )

    # ---- Fast path: F lane-aligned -> fold K into the lane axis (2-D layout).
    row_bytes_2d = K * F * itemsize
    if F % _LANE == 0 and pack * row_bytes_2d <= target_bytes:
        x2 = x.reshape(N, K * F)              # contiguous reshape: free
        w2 = comb_weight.reshape(1, K * F)

        bn = max(pack, (target_bytes // row_bytes_2d) // pack * pack)
        bn = min(bn, _round_up(N, pack))
        if multi_tc and N > pack and bn >= N:
            bn = _round_up((N + 1) // 2, pack)

        kernel = functools.partial(_kernel_2d, K=K, F=F)
        return pl.pallas_call(
            kernel,
            out_shape=jax.ShapeDtypeStruct((N, F), x.dtype),
            grid_spec=pltpu.PrefetchScalarGridSpec(
                num_scalar_prefetch=0,
                grid=(pl.cdiv(N, bn),),
                in_specs=[
                    pl.BlockSpec((bn, K * F), lambda i: (i, 0)),
                    pl.BlockSpec((1, K * F), lambda i: (0, 0)),
                ],
                out_specs=pl.BlockSpec((bn, F), lambda i: (i, 0)),
            ),
            compiler_params=compiler_params,
            cost_estimate=cost,
        )(x2, w2)

    # ---- Fallback path: ragged F (or huge K*F) -> 3-D layout, XLU reduce over K.
    bn, bf = _choose_blocks_3d(N, K, F, itemsize, pack, target_bytes, multi_tc)
    compiler_params_3d = pltpu.CompilerParams(
        dimension_semantics=("parallel", "parallel"),
        vmem_limit_bytes=vmem_limit,
    )
    return pl.pallas_call(
        _kernel_3d,
        out_shape=jax.ShapeDtypeStruct((N, F), x.dtype),
        grid_spec=pltpu.PrefetchScalarGridSpec(
            num_scalar_prefetch=0,
            grid=(pl.cdiv(F, bf), pl.cdiv(N, bn)),
            in_specs=[
                pl.BlockSpec((bn, K, bf), lambda j, i: (i, 0, j)),
                pl.BlockSpec((1, K, bf), lambda j, i: (0, 0, j)),
            ],
            out_specs=pl.BlockSpec((bn, bf), lambda j, i: (i, j)),
        ),
        compiler_params=compiler_params_3d,
        cost_estimate=cost,
    )(x, comb_weight)


if __name__ == "__main__":
    key = jax.random.PRNGKey(0)

    # Case 1: toy shape matching the module (channels=32, level=4, batch=8).
    # F=32 is not lane-aligned -> exercises the 3-D fallback kernel (forced Pallas).
    N1, K1, F1 = 8, 4, 32
    k1, k2 = jax.random.split(key)
    x1 = jax.random.normal(k1, (N1, K1, F1), dtype=jnp.float32)
    # reset_parameters(): np.random.uniform(1/K, 1/K, ...) -> constant 1/K.
    w1 = jnp.full((1, K1, F1), 1.0 / K1, dtype=jnp.float32)
    out1 = jax.block_until_ready(combination_forward(x1, w1, use_pallas=True))
    ref1 = jnp.sum(x1 * w1, axis=1)
    assert out1.shape == (N1, F1)
    assert jnp.allclose(out1, ref1, atol=1e-6, rtol=1e-6)

    # Case 2: lane-aligned feature dim -> exercises the 2-D (K folded into lanes)
    # fast path, lane-dense stores and contiguous x DMAs.
    N2, K2, F2 = 64, 4, 128
    k3, k4 = jax.random.split(k2)
    x2 = jax.random.normal(k3, (N2, K2, F2), dtype=jnp.float32)
    w2 = jax.random.uniform(k4, (1, K2, F2), dtype=jnp.float32,
                            minval=-1.0 / K2, maxval=1.0 / K2)
    out2 = jax.block_until_ready(combination_forward(x2, w2, use_pallas=True))
    ref2 = jnp.sum(x2 * w2, axis=1)
    assert out2.shape == (N2, F2)
    assert jnp.allclose(out2, ref2, atol=1e-5, rtol=1e-5)

    print("KERNEL_OK")
</pallas_src>

<mosaic_0001>
module attributes {stable_mosaic.version = 11 : i64} {
  func.func @_kernel_3d(%arg0: i32, %arg1: i32, %arg2: memref<8x4x32xf32, #tpu.memory_space<vmem>>, %arg3: memref<1x4x32xf32, #tpu.memory_space<vmem>>, %arg4: memref<8x32xf32, #tpu.memory_space<vmem>>) attributes {dimension_semantics = [#tpu.dimension_semantics<parallel>, #tpu.dimension_semantics<parallel>], iteration_bounds = array<i64: 1, 1>, scalar_prefetch = 0 : i64, scratch_operands = 0 : i64, tpu.core_type = #tpu.core_type<tc>, window_params = [{transform_indices = @transform_0, window_bounds = array<i64: 8, 4, 32>}, {transform_indices = @transform_1, window_bounds = array<i64: 1, 4, 32>}, {transform_indices = @transform_2, window_bounds = array<i64: 8, 32>}]} {
    %c0 = arith.constant 0 : index
    %c0_0 = arith.constant 0 : index
    %c0_1 = arith.constant 0 : index
    %0 = vector.load %arg2[%c0, %c0_0, %c0_1] : memref<8x4x32xf32, #tpu.memory_space<vmem>>, vector<8x4x32xf32>
    %c0_2 = arith.constant 0 : index
    %c0_3 = arith.constant 0 : index
    %c0_4 = arith.constant 0 : index
    %1 = vector.load %arg3[%c0_2, %c0_3, %c0_4] : memref<1x4x32xf32, #tpu.memory_space<vmem>>, vector<1x4x32xf32>
    %2 = vector.broadcast %1 : vector<1x4x32xf32> to vector<8x4x32xf32>
    %3 = arith.mulf %0, %2 : vector<8x4x32xf32>
    %cst = arith.constant dense<0.000000e+00> : vector<8x32xf32>
    %4 = vector.multi_reduction <add>, %3, %cst [1] : vector<8x4x32xf32> to vector<8x32xf32>
    %c0_5 = arith.constant 0 : index
    %c0_6 = arith.constant 0 : index
    %5 = vector.load %arg4[%c0_5, %c0_6] : memref<8x32xf32, #tpu.memory_space<vmem>>, vector<8x32xf32>
    tpu.vector_store %arg4[%c0_5, %c0_6], %4 {strides = array<i32>} : memref<8x32xf32, #tpu.memory_space<vmem>>, vector<8x32xf32>,
    return
  }
  func.func @transform_0(%arg0: i32, %arg1: i32) -> (i32, i32, i32) {
    %c0_i32 = arith.constant 0 : i32
    %c0_i32_0 = arith.constant 0 : i32
    return %arg1, %c0_i32, %arg0 : i32, i32, i32
  }
  func.func @transform_1(%arg0: i32, %arg1: i32) -> (i32, i32, i32) {
    %c0_i32 = arith.constant 0 : i32
    %c0_i32_0 = arith.constant 0 : i32
    %c0_i32_1 = arith.constant 0 : i32
    return %c0_i32, %c0_i32_0, %arg0 : i32, i32, i32
  }
  func.func @transform_2(%arg0: i32, %arg1: i32) -> (i32, i32) {
    %c0_i32 = arith.constant 0 : i32
    return %arg1, %arg0 : i32, i32
  }
}

</mosaic_0001>

<bundles_post_ra>
// kernel: combination_forward.1
= control target key start
LH: loop header
LB: loop body
LE: loop exit
PB: predicated region body
PF: predicated region fallthrough
CT: control target
= control target key end

     0   :  { %7 = vsyncpa [#allocation3], 0  ;;  %s296_s0 = inlined_call_operand.hbm [shape: f32[8,4,32], index: 0, kind: input, shape index: {}]   ;;  %s297_s1 = inlined_call_operand.hbm [shape: f32[1,4,32], index: 1, kind: input, shape index: {}]   ;;  %s298_s2 = inlined_call_operand.hbm [shape: f32[8,32], index: 2, kind: output, shape index: {}]  }
   0x1   :  { %8 = vsyncpa [#allocation6], 0 }
   0x2   :  { %9 = vsyncpa [#allocation4], 0  ;;  %s230_s9 = smov [#allocation2]   ;;  %s158_s13 = scalar_lea.hbm %s296_s0, 512 }
   0x3   :  { %s15_s10 = sshll.u32 %s230_s9, 4  ;;  %p159_p0 = scmp.ne.s32.totalorder %s296_s0, %s158_s13  ;;  %s16_s10 = int_to_ptr.vmem [resolvable:$true] %s15_s10 }
   0x4   :  { %p162_p1 = scmp.lt.u32.totalorder %s158_s13, %s296_s0 }
   0x6   :  { %p164_p2 = pnand %p162_p1, %p159_p0 }
   0x8   :  { %167 = shalt.err (!%p164_p2)
}
   0x9   :  { %s168_s18 = scalar_lea.vmem %s16_s10, 512  ;;  %p173_p4 = scmp.lt.s32.totalorder %s16_s10, %s16_s10 }
   0xa   :  { %p169_p3 = scmp.ne.s32.totalorder %s16_s10, %s168_s18  ;;  %p174_p5 = scmp.lt.s32.totalorder %s168_s18, %s168_s18 }
   0xc   :  { %p175_p6 = por %p174_p5, %p173_p4 }
   0xe   :  { %p176_p7 = pnand %p175_p6, %p169_p3 }
  0x10   :  { %179 = shalt.err (!%p176_p7)
}
  0x11   :  { %s231_s19 = smov 64   ;;  %s232_s20 = smov 4  }
  0x12   :  { %21 = dma.hbm_to_vmem [thread:$0]  %s296_s0, 512, %s16_s10, [#allocation3], %s231_s19, %s231_s19, %s232_s20  }
  0x13   :  { %s233_s23 = smov [#allocation5]   ;;  %s180_s27 = scalar_lea.hbm %s297_s1, 64 }
  0x14   :  { %s28_s24 = sshll.u32 %s233_s23, 4  ;;  %p181_p8 = scmp.ne.s32.totalorder %s297_s1, %s180_s27  ;;  %s29_s24 = int_to_ptr.vmem [resolvable:$true] %s28_s24 }
  0x15   :  { %p184_p9 = scmp.lt.u32.totalorder %s180_s27, %s297_s1 }
  0x17   :  { %p186_p10 = pnand %p184_p9, %p181_p8 }
  0x19   :  { %189 = shalt.err (!%p186_p10)
}
  0x1a   :  { %s190_s4 = scalar_lea.vmem %s29_s24, 64  ;;  %p195_p12 = scmp.lt.s32.totalorder %s29_s24, %s29_s24 }
  0x1b   :  { %p191_p11 = scmp.ne.s32.totalorder %s29_s24, %s190_s4  ;;  %p196_p13 = scmp.lt.s32.totalorder %s190_s4, %s190_s4 }
  0x1d   :  { %p197_p0 = por %p196_p13, %p195_p12 }
  0x1f   :  { %p198_p1 = pnand %p197_p0, %p191_p11 }
  0x21   :  { %201 = shalt.err (!%p198_p1)
}
  0x22   :  { %31 = dma.hbm_to_vmem [thread:$0]  %s297_s1, 64, %s29_s24, [#allocation6]  }
  0x23   :  { %224 = dma.done.wait [#allocation3], 512  }
  0x24   :  { %225 = vsyncadd [#allocation3], 4294966784 }
  0x25   :  { %226 = dma.done.wait [#allocation6], 64  }
  0x26   :  { %227 = vsyncadd [#allocation6], 4294967232  ;;  %vm55_vm0 = vcmask 257024   ;;  %v38_v0 = vld [vmem:[#allocation2] sm:$0xf]  ;;  %vm120_vm1 = vcmask 1041409  }
  0x27   :  { %v39_v1 = vld [vmem:[#allocation2 + $0x4] sm:$0xf]  ;;  %v40_v2 = vld [vmem:[#allocation2 + $0x8] sm:$0xf]  ;;  %v41_v3 = vld [vmem:[#allocation2 + $0xc] sm:$0xf] }
  0x28   :  { %v42_v4 = vld [vmem:[#allocation2 + $0x10] sm:$0xf]  ;;  %v43_v5 = vld [vmem:[#allocation2 + $0x14] sm:$0xf]  ;;  %v44_v6 = vld [vmem:[#allocation2 + $0x18] sm:$0xf] }
  0x29   :  { %v45_v7 = vld [vmem:[#allocation2 + $0x1c] sm:$0xf]  ;;  %v46_v8 = vld [vmem:[#allocation5] sm:$0xf]  ;;  %vm122_vm2 = vcmask 1042434   ;;  %vm124_vm3 = vcmask 1043459  }
  0x2a   :  { %v47_v9 = vmul.f32 %v46_v8, %v38_v0  ;;  %v48_v10 = vmul.f32 %v46_v8, %v39_v1  ;;  %v49_v11 = vmul.f32 %v46_v8, %v40_v2  ;;  %v50_v12 = vmul.f32 %v46_v8, %v41_v3  ;;  %s234_s1 = smov [#allocation7]  }
  0x2b   :  { %v51_v13 = vmul.f32 %v46_v8, %v42_v4  ;;  %v52_v14 = vmul.f32 %v46_v8, %v43_v5  ;;  %v53_v15 = vmul.f32 %v46_v8, %v44_v6  ;;  %v54_v16 = vmul.f32 %v46_v8, %v45_v7  ;;  %s143_s6 = sshll.u32 %s234_s1, 4  ;;  %s144_s6 = int_to_ptr.vmem [resolvable:$true] %s143_s6 }
  0x2c   :  { %v56_v17 = vsel %vm55_vm0, %v47_v9, 0.0  ;;  %v63_v18 = vsel %vm55_vm0, %v48_v10, 0.0  ;;  %v70_v19 = vsel %vm55_vm0, %v49_v11, 0.0  ;;  %v77_v20 = vsel %vm55_vm0, %v50_v12, 0.0  ;;  %s202_s7 = scalar_lea.vmem %s144_s6, 128  ;;  %p207_p3 = scmp.lt.s32.totalorder %s144_s6, %s144_s6 }
  0x2d   :  { %v57_v21 = vrot.slane %v56_v17, 4  ;;  %v64_v22 = vrot.slane %v63_v18, 4  ;;  %v71_v23 = vrot.slane %v70_v19, 4  ;;  %v78_v24 = vrot.slane %v77_v20, 4  ;;  %p203_p2 = scmp.ne.s32.totalorder %s144_s6, %s202_s7  ;;  %p208_p4 = scmp.lt.s32.totalorder %s202_s7, %s202_s7 }
  0x2e   :  { %v84_v25 = vsel %vm55_vm0, %v51_v13, 0.0  ;;  %v91_v26 = vsel %vm55_vm0, %v52_v14, 0.0  ;;  %v98_v27 = vsel %vm55_vm0, %v53_v15, 0.0  ;;  %v105_v28 = vsel %vm55_vm0, %v54_v16, 0.0 }
  0x2f   :  { %v58_v29 = vadd.f32 %v57_v21, %v56_v17  ;;  %v65_v30 = vadd.f32 %v64_v22, %v63_v18  ;;  %v72_v31 = vadd.f32 %v71_v23, %v70_v19  ;;  %v79_v32 = vadd.f32 %v78_v24, %v77_v20  ;;  %p209_p5 = por %p208_p4, %p207_p3 }
  0x30   :  { %v85_v33 = vrot.slane %v84_v25, 4  ;;  %v92_v34 = vrot.slane %v91_v26, 4  ;;  %v99_v35 = vrot.slane %v98_v27, 4  ;;  %v106_v36 = vrot.slane %v105_v28, 4 }
  0x31   :  { %v59_v37 = vrot.slane %v58_v29, 2  ;;  %v66_v38 = vrot.slane %v65_v30, 2  ;;  %v73_v39 = vrot.slane %v72_v31, 2  ;;  %v80_v40 = vrot.slane %v79_v32, 2  ;;  %p210_p6 = pnand %p209_p5, %p203_p2 }
  0x32   :  { %v86_v41 = vadd.f32 %v85_v33, %v84_v25  ;;  %v93_v42 = vadd.f32 %v92_v34, %v91_v26  ;;  %v100_v43 = vadd.f32 %v99_v35, %v98_v27  ;;  %v107_v44 = vadd.f32 %v106_v36, %v105_v28 }
  0x33   :  { %v60_v45 = vadd.f32 %v59_v37, %v58_v29  ;;  %v67_v46 = vadd.f32 %v66_v38, %v65_v30  ;;  %v74_v47 = vadd.f32 %v73_v39, %v72_v31  ;;  %v81_v48 = vadd.f32 %v80_v40, %v79_v32 }
  0x34   :  { %v87_v49 = vrot.slane %v86_v41, 2  ;;  %v94_v50 = vrot.slane %v93_v42, 2  ;;  %v101_v51 = vrot.slane %v100_v43, 2  ;;  %v108_v52 = vrot.slane %v107_v44, 2 }
  0x35   :  { %v61_v53 = vrot.slane %v60_v45, 1  ;;  %v68_v54 = vrot.slane %v67_v46, 1  ;;  %v75_v55 = vrot.slane %v74_v47, 1  ;;  %v82_v56 = vrot.slane %v81_v48, 1 }
  0x36   :  { %v88_v57 = vadd.f32 %v87_v49, %v86_v41  ;;  %v95_v58 = vadd.f32 %v94_v50, %v93_v42  ;;  %v102_v59 = vadd.f32 %v101_v51, %v100_v43  ;;  %v109_v60 = vadd.f32 %v108_v52, %v107_v44 }
  0x37   :  { %v62_v61 = vadd.f32 %v61_v53, %v60_v45  ;;  %v69_v62 = vadd.f32 %v68_v54, %v67_v46  ;;  %v76_v63 = vadd.f32 %v75_v55, %v74_v47  ;;  %v83_v0 = vadd.f32 %v82_v56, %v81_v48 }
  0x38   :  { %v89_v1 = vrot.slane %v88_v57, 1  ;;  %v96_v2 = vrot.slane %v95_v58, 1  ;;  %v103_v3 = vrot.slane %v102_v59, 1  ;;  %v110_v4 = vrot.slane %v109_v60, 1 }
  0x39   :  { %v121_v5 = vsel %vm120_vm1, %v69_v62, %v62_v61  ;;  %vm126_vm4 = vcmask 1044484   ;;  %vm128_vm5 = vcmask 1045509   ;;  %vm130_vm6 = vcmask 1046534  }
  0x3a   :  { %v90_v6 = vadd.f32 %v89_v1, %v88_v57  ;;  %v97_v7 = vadd.f32 %v96_v2, %v95_v58  ;;  %v104_v8 = vadd.f32 %v103_v3, %v102_v59  ;;  %v123_v9 = vsel %vm122_vm2, %v76_v63, %v121_v5 }
  0x3b   :  { %v111_v10 = vadd.f32 %v110_v4, %v109_v60  ;;  %v125_v11 = vsel %vm124_vm3, %v83_v0, %v123_v9  ;;  %vm132_vm7 = vcmask 1047559   ;;  %vm135_vm8 = vcmask 261120  }
  0x3c   :  { %v127_v12 = vsel %vm126_vm4, %v90_v6, %v125_v11 }
  0x3d   :  { %v129_v13 = vsel %vm128_vm5, %v97_v7, %v127_v12 }
  0x3e   :  { %v131_v14 = vsel %vm130_vm6, %v104_v8, %v129_v13 }
  0x3f   :  { %v133_v15 = vsel %vm132_vm7, %v111_v10, %v131_v14 }
  0x40   :  { %136 = vst.msk [vmem:[#allocation7] sm:$0xff] %vm135_vm8, %v133_v15 }
  0x41   :  { %213 = shalt.err (!%p210_p6)
}
  0x42   :  { %s214_s10 = scalar_lea.hbm %s298_s2, 128 }
  0x43   :  { %p215_p7 = scmp.ne.s32.totalorder %s298_s2, %s214_s10  ;;  %p218_p8 = scmp.lt.u32.totalorder %s214_s10, %s298_s2 }
  0x45   :  { %p220_p9 = pnand %p218_p8, %p215_p7 }
  0x47   :  { %223 = shalt.err (!%p220_p9)
}
  0x48   :  { %146 = dma.vmem_to_hbm [thread:$0]  %s144_s6, 128, %s298_s2, [#allocation4]  }
  0x49   :  { %228 = dma.done.wait [#allocation4], 128  }
  0x4a   :  { %229 = vsyncadd [#allocation4], 4294967168 }
  0x4b   :  { %150 = vsyncpa [#allocation3], 1 }
  0x4c   :  { %151 = vsyncpa [#allocation6], 1 }
  0x4d   :  { %152 = vsyncpa [#allocation4], 1 }

</bundles_post_ra>
